<compile_context>
chip_gen: v7x
topology: tpu7x:2x2x1
jax: 0.10.0
libtpu: 0.0.40
codegen_flags: <defaults>
</compile_context>

<pallas_src>
from functools import partial

import numpy as np
import jax
import jax.numpy as jnp
from jax import lax
from jax.experimental import pallas as pl
from jax.experimental.pallas import tpu as pltpu


def _cdiv(a, b):
    return -(-a // b)


def _round_up(a, b):
    return _cdiv(a, b) * b


def _vmem_limit_bytes():
    """Scoped-VMEM limit with headroom, derived from the chip's physical VMEM."""
    cap = None
    try:
        info = pltpu.get_tpu_info()
        cap = getattr(info, "vmem_capacity_bytes", None)
    except Exception:
        cap = None
    if not cap:
        cap = 64 << 20                      # conservative fallback (v7x per-TC VMEM)
    # 75% of physical, capped at 96 MiB: 48 MiB on v7x (64 MiB), 96 MiB on v5e/v6e (128 MiB).
    return min((int(cap) * 3) // 4, 96 << 20)


def _select_tiles(n_rows, c_out, K, stride, l_out, q_max, budget_bytes):
    """Pick (TB rows, TL lanes, lane steps, halo) that fill (but fit) VMEM."""
    lane_blocks = _cdiv(l_out, 128)
    halo = _round_up(q_max, 128) if q_max > 0 else 0
    for tb in [d for d in range(n_rows, 0, -1) if n_rows % d == 0]:
        # Full-time-axis de-interleaved input rows, double-buffered; the stride axis
        # is padded to 8 sublanes in VMEM.
        l_ds_ub = lane_blocks * 128 + halo + 1024
        in_bytes = 2 * tb * max(stride, 8) * l_ds_ub * 4
        # Per 128-lane block: double-buffered output tile + im2col VMEM scratch row.
        per_blk = tb * 128 * 4 * (2 * c_out + _round_up(K + 1, 8))
        avail = budget_bytes - in_bytes - (2 << 20)          # headroom for weights/compiler
        if avail >= per_blk or tb == 1:
            cap_blocks = max(1, min(avail // per_blk, 256))   # <=32768 lanes (~16 MiB out blk)
            steps = _cdiv(lane_blocks, cap_blocks)            # ceil split: no divisor collapse
            tl_blocks = _cdiv(lane_blocks, steps)
            return tb, 128 * tl_blocks, steps, halo
    return 1, 128, lane_blocks, halo                          # unreachable (tb=1 always returns)


def _make_kernel(*, tb, tl, halo, K, stride, c_out):
    k_ext = K + 1                                             # K conv taps + 1 bias tap
    used_phases = sorted({k % stride for k in range(K)})

    def kernel(xr_ref, w_ref, o_ref, patch_ref):
        # xr_ref:    (TB, stride, L_ds)  de-interleaved, zero-padded signal rows
        # w_ref:     (C_out, K+1)        weight-normed taps, bias in the last column
        # o_ref:     (TB, C_out, TL)     lane-dense output tile (ragged last block masked)
        # patch_ref: (TB, K+1, TL)       VMEM scratch: fused im2col tile
        j = pl.program_id(1)
        base = pl.multiple_of(j * tl, 128)

        # One aligned, lane-dense slab load per stride phase, shared by all its taps.
        slabs = {p: xr_ref[:, p, pl.ds(base, tl + halo)] for p in used_phases}

        # Build the im2col tile: tap k = q*stride + p reads xr[:, p, t+q] for t in tile.
        for k in range(K):
            q, p = k // stride, k % stride
            patch_ref[:, k, :] = lax.slice_in_dim(slabs[p], q, q + tl, axis=1)
        # Bias rides along the MXU contraction via a constant-ones tap.
        patch_ref[:, K, :] = jnp.ones((tb, tl), jnp.float32)

        # Single batched MXU contraction; output order (b, c, t) matches o_ref (no transpose).
        w_b = jnp.broadcast_to(w_ref[...][None], (tb, c_out, k_ext))
        o_ref[...] = jnp.einsum(
            "bck,bkt->bct", w_b, patch_ref[...],
            preferred_element_type=jnp.float32,
            precision=lax.Precision.HIGHEST,   # f32-exact; MXU is far from binding (HBM-bound)
        ).astype(o_ref.dtype)

    return kernel


@partial(jax.jit, static_argnames=("kernel_size", "stride", "padding"))
def encoder_mix_forward(x, w_v, g, bias, *, kernel_size, stride, padding):
    """x: (B, L, S) float32.  Returns (S, B, C_out, L_out) like the PyTorch module."""
    B, L, S = x.shape
    C_out = w_v.shape[0]
    K = kernel_size

    # weight_norm reparameterization (glue): w = g * v / ||v||, norm over dims (1, 2).
    v_norm = jnp.sqrt(jnp.sum(w_v * w_v, axis=(1, 2), keepdims=True))
    w_eff = (g * w_v / v_norm)[:, 0, :]                         # (C_out, K)
    w_ext = jnp.concatenate([w_eff, bias[:, None]], axis=1)     # (C_out, K+1): bias tap folded in

    L_pad = L + 2 * padding
    L_out = (L_pad - K) // stride + 1                           # Conv1d floor division
    N = S * B                                                   # fold speakers into rows
    q_max = (K - 1) // stride                                   # max de-interleaved tap offset

    vmem_limit = _vmem_limit_bytes()
    TB, TL, lane_steps, HALO = _select_tiles(N, C_out, K, stride, L_out, q_max, vmem_limit)

    # De-interleave by stride so all in-kernel tap reads are contiguous lane slices:
    #   xr[n, p, q] = x_pad[n, q*stride + p]
    L_ds = _round_up(max(lane_steps * TL + HALO, _cdiv(L_pad, stride)), 128)
    xs = jnp.transpose(x, (2, 0, 1)).reshape(N, L)              # speaker-major rows
    xp = jnp.pad(xs, ((0, 0), (padding, L_ds * stride - L - padding)))
    xr = xp.reshape(N, L_ds, stride).transpose(0, 2, 1)         # (N, stride, L_ds)

    out = pl.pallas_call(
        _make_kernel(tb=TB, tl=TL, halo=HALO, K=K, stride=stride, c_out=C_out),
        out_shape=jax.ShapeDtypeStruct((N, C_out, L_out), jnp.float32),
        grid=(N // TB, lane_steps),
        in_specs=[
            # Full time axis per row-block; constant along the lane axis so it is
            # fetched once per row-block (no redundant DMAs across lane steps).
            pl.BlockSpec((TB, stride, L_ds), lambda i, j: (i, 0, 0)),
            pl.BlockSpec((C_out, K + 1), lambda i, j: (0, 0)),
        ],
        # Exact-sized output: ragged last lane block is masked on writeback, so no
        # post-kernel slice copy is needed.
        out_specs=pl.BlockSpec((TB, C_out, TL), lambda i, j: (i, 0, j)),
        scratch_shapes=[pltpu.VMEM((TB, K + 1, TL), jnp.float32)],
        compiler_params=pltpu.CompilerParams(
            dimension_semantics=("parallel", "parallel"),
            vmem_limit_bytes=vmem_limit,
        ),
    )(xr, w_ext)                                                # (N, C_out, L_out)

    return out.reshape(S, B, C_out, L_out)                      # free leading-dim split


if __name__ == "__main__":
    key = jax.random.PRNGKey(0)
    # Small shapes consistent with the module's forward (num_spks must be 2 or 3).
    B, L, S = 2, 16, 2
    in_channels, out_channels, kernel_size, stride, padding = 1, 32, 4, 2, 2

    k1, k2, k3 = jax.random.split(key, 3)
    fan_in = in_channels * kernel_size
    # v (the weight_norm direction parameter), kaiming-style scale
    w_v = jax.random.normal(k1, (out_channels, in_channels, kernel_size), jnp.float32) \
        * float(np.sqrt(2.0 / fan_in))
    # weight_norm init: g = ||v|| per output channel
    g = jnp.sqrt(jnp.sum(w_v * w_v, axis=(1, 2), keepdims=True))
    bias = jax.random.uniform(k2, (out_channels,), jnp.float32, -0.1, 0.1)
    x = jax.random.normal(k3, (B, L, S), jnp.float32)

    y = encoder_mix_forward(x, w_v, g, bias,
                            kernel_size=kernel_size, stride=stride, padding=padding)
    y = jax.block_until_ready(y)

    # Pure-JAX reference (same weight_norm formula + lax conv) for validation.
    v_norm = jnp.sqrt(jnp.sum(w_v * w_v, axis=(1, 2), keepdims=True))
    w_eff = g * w_v / v_norm
    refs = []
    for s in range(S):
        src = x[:, :, s][:, None, :]                           # (B, 1, L)
        r = lax.conv_general_dilated(
            src, w_eff, window_strides=(stride,),
            padding=[(padding, padding)],
            dimension_numbers=("NCH", "OIH", "NCH"),
            precision=lax.Precision.HIGHEST)
        refs.append(r + bias[None, :, None])
    ref = jnp.stack(refs, axis=0)                               # (S, B, C_out, L_out)

    assert y.shape == ref.shape, (y.shape, ref.shape)
    np.testing.assert_allclose(np.asarray(y), np.asarray(ref), rtol=1e-4, atol=1e-4)
    print("KERNEL_OK")
</pallas_src>

<mosaic_0001>
module attributes {stable_mosaic.version = 11 : i64} {
  func.func @kernel(%arg0: i32, %arg1: i32, %arg2: memref<4x2x256xf32, #tpu.memory_space<vmem>>, %arg3: memref<32x5xf32, #tpu.memory_space<vmem>>, %arg4: memref<4x32x128xf32, #tpu.memory_space<vmem>>, %arg5: memref<4x5x128xf32, #tpu.memory_space<vmem>>) attributes {dimension_semantics = [#tpu.dimension_semantics<parallel>, #tpu.dimension_semantics<parallel>], iteration_bounds = array<i64: 1, 1>, scalar_prefetch = 0 : i64, scratch_operands = 1 : i64, tpu.core_type = #tpu.core_type<tc>, window_params = [{transform_indices = @transform_0, window_bounds = array<i64: 4, 2, 256>}, {pipeline_mode = #tpu.pipeline_mode<synchronous>, transform_indices = @transform_1, window_bounds = array<i64: 32, 5>}, {transform_indices = @transform_2, window_bounds = array<i64: 4, 32, 128>}]} {
    %c128_i32 = arith.constant 128 : i32
    %0 = arith.muli %arg1, %c128_i32 : i32
    %1 = tpu.assume_multiple %0, 128 : i32
    %c0 = arith.constant 0 : index
    %c0_0 = arith.constant 0 : index
    %2 = arith.index_cast %1 : i32 to index
    %3 = vector.load %arg2[%c0, %c0_0, %2] : memref<4x2x256xf32, #tpu.memory_space<vmem>>, vector<4x1x256xf32>
    %4 = vector.shape_cast %3 : vector<4x1x256xf32> to vector<4x256xf32>
    %c0_1 = arith.constant 0 : index
    %c1 = arith.constant 1 : index
    %5 = arith.index_cast %1 : i32 to index
    %6 = vector.load %arg2[%c0_1, %c1, %5] : memref<4x2x256xf32, #tpu.memory_space<vmem>>, vector<4x1x256xf32>
    %7 = vector.shape_cast %6 : vector<4x1x256xf32> to vector<4x256xf32>
    %8 = vector.extract_strided_slice %4 {offsets = [0, 0], sizes = [4, 128], strides = [1, 1]} : vector<4x256xf32> to vector<4x128xf32>
    %c0_2 = arith.constant 0 : index
    %c0_3 = arith.constant 0 : index
    %c0_4 = arith.constant 0 : index
    %9 = vector.load %arg5[%c0_2, %c0_3, %c0_4] : memref<4x5x128xf32, #tpu.memory_space<vmem>>, vector<4x1x128xf32>
    %10 = vector.shape_cast %9 : vector<4x1x128xf32> to vector<4x128xf32>
    %11 = vector.shape_cast %8 : vector<4x128xf32> to vector<4x1x128xf32>
    tpu.vector_store %arg5[%c0_2, %c0_3, %c0_4], %11 {strides = array<i32>} : memref<4x5x128xf32, #tpu.memory_space<vmem>>, vector<4x1x128xf32>,
    %12 = vector.extract_strided_slice %7 {offsets = [0, 0], sizes = [4, 128], strides = [1, 1]} : vector<4x256xf32> to vector<4x128xf32>
    %c0_5 = arith.constant 0 : index
    %c1_6 = arith.constant 1 : index
    %c0_7 = arith.constant 0 : index
    %13 = vector.load %arg5[%c0_5, %c1_6, %c0_7] : memref<4x5x128xf32, #tpu.memory_space<vmem>>, vector<4x1x128xf32>
    %14 = vector.shape_cast %13 : vector<4x1x128xf32> to vector<4x128xf32>
    %15 = vector.shape_cast %12 : vector<4x128xf32> to vector<4x1x128xf32>
    tpu.vector_store %arg5[%c0_5, %c1_6, %c0_7], %15 {strides = array<i32>} : memref<4x5x128xf32, #tpu.memory_space<vmem>>, vector<4x1x128xf32>,
    %16 = vector.extract_strided_slice %4 {offsets = [0, 1], sizes = [4, 128], strides = [1, 1]} : vector<4x256xf32> to vector<4x128xf32>
    %c0_8 = arith.constant 0 : index
    %c2 = arith.constant 2 : index
    %c0_9 = arith.constant 0 : index
    %17 = vector.load %arg5[%c0_8, %c2, %c0_9] : memref<4x5x128xf32, #tpu.memory_space<vmem>>, vector<4x1x128xf32>
    %18 = vector.shape_cast %17 : vector<4x1x128xf32> to vector<4x128xf32>
    %19 = vector.shape_cast %16 : vector<4x128xf32> to vector<4x1x128xf32>
    tpu.vector_store %arg5[%c0_8, %c2, %c0_9], %19 {strides = array<i32>} : memref<4x5x128xf32, #tpu.memory_space<vmem>>, vector<4x1x128xf32>,
    %20 = vector.extract_strided_slice %7 {offsets = [0, 1], sizes = [4, 128], strides = [1, 1]} : vector<4x256xf32> to vector<4x128xf32>
    %c0_10 = arith.constant 0 : index
    %c3 = arith.constant 3 : index
    %c0_11 = arith.constant 0 : index
    %21 = vector.load %arg5[%c0_10, %c3, %c0_11] : memref<4x5x128xf32, #tpu.memory_space<vmem>>, vector<4x1x128xf32>
    %22 = vector.shape_cast %21 : vector<4x1x128xf32> to vector<4x128xf32>
    %23 = vector.shape_cast %20 : vector<4x128xf32> to vector<4x1x128xf32>
    tpu.vector_store %arg5[%c0_10, %c3, %c0_11], %23 {strides = array<i32>} : memref<4x5x128xf32, #tpu.memory_space<vmem>>, vector<4x1x128xf32>,
    %cst = arith.constant 1.000000e+00 : f32
    %24 = vector.broadcast %cst : f32 to vector<4x128xf32>
    %c0_12 = arith.constant 0 : index
    %c4 = arith.constant 4 : index
    %c0_13 = arith.constant 0 : index
    %25 = vector.load %arg5[%c0_12, %c4, %c0_13] : memref<4x5x128xf32, #tpu.memory_space<vmem>>, vector<4x1x128xf32>
    %26 = vector.shape_cast %25 : vector<4x1x128xf32> to vector<4x128xf32>
    %27 = vector.shape_cast %24 : vector<4x128xf32> to vector<4x1x128xf32>
    tpu.vector_store %arg5[%c0_12, %c4, %c0_13], %27 {strides = array<i32>} : memref<4x5x128xf32, #tpu.memory_space<vmem>>, vector<4x1x128xf32>,
    %c0_14 = arith.constant 0 : index
    %c0_15 = arith.constant 0 : index
    %28 = vector.load %arg3[%c0_14, %c0_15] : memref<32x5xf32, #tpu.memory_space<vmem>>, vector<32x5xf32>
    %29 = vector.shape_cast %28 : vector<32x5xf32> to vector<1x32x5xf32>
    %30 = vector.shape_cast %29 : vector<1x32x5xf32> to vector<1x32x5xf32>
    %31 = vector.broadcast %30 : vector<1x32x5xf32> to vector<4x32x5xf32>
    %c0_16 = arith.constant 0 : index
    %c0_17 = arith.constant 0 : index
    %c0_18 = arith.constant 0 : index
    %32 = vector.load %arg5[%c0_16, %c0_17, %c0_18] : memref<4x5x128xf32, #tpu.memory_space<vmem>>, vector<4x5x128xf32>
    "tpu.trace_start"() <{level = 10 : i32, message = "bck,bkt->bct"}> : () -> ()
    %cst_19 = arith.constant dense<0.000000e+00> : vector<4x32x128xf32>
    %33 = tpu.matmul %31, %32, %cst_19 {dimension_numbers = #tpu.dot_dimension_numbers<[2], [1], [1], [2], [0, 0, 0, 1, 1, 2], [0], [0]>, precision = #tpu.contract_precision<fp32>} : vector<4x32x5xf32>, vector<4x5x128xf32>, vector<4x32x128xf32> -> vector<4x32x128xf32>
    "tpu.trace_stop"() : () -> ()
    %c0_20 = arith.constant 0 : index
    %c0_21 = arith.constant 0 : index
    %c0_22 = arith.constant 0 : index
    %34 = vector.load %arg4[%c0_20, %c0_21, %c0_22] : memref<4x32x128xf32, #tpu.memory_space<vmem>>, vector<4x32x128xf32>
    tpu.vector_store %arg4[%c0_20, %c0_21, %c0_22], %33 {strides = array<i32>} : memref<4x32x128xf32, #tpu.memory_space<vmem>>, vector<4x32x128xf32>,
    return
  }
  func.func @transform_0(%arg0: i32, %arg1: i32) -> (i32, i32, i32) {
    %c0_i32 = arith.constant 0 : i32
    %c0_i32_0 = arith.constant 0 : i32
    %c0_i32_1 = arith.constant 0 : i32
    return %arg0, %c0_i32, %c0_i32_0 : i32, i32, i32
  }
  func.func @transform_1(%arg0: i32, %arg1: i32) -> (i32, i32) {
    %c0_i32 = arith.constant 0 : i32
    %c0_i32_0 = arith.constant 0 : i32
    %c0_i32_1 = arith.constant 0 : i32
    return %c0_i32, %c0_i32_0 : i32, i32
  }
  func.func @transform_2(%arg0: i32, %arg1: i32) -> (i32, i32, i32) {
    %c0_i32 = arith.constant 0 : i32
    %c0_i32_0 = arith.constant 0 : i32
    return %arg0, %c0_i32, %arg1 : i32, i32, i32
  }
}

</mosaic_0001>

<bundles_post_ra>
// kernel: encoder_mix_forward.1
= control target key start
LH: loop header
LB: loop body
LE: loop exit
PB: predicated region body
PF: predicated region fallthrough
CT: control target
= control target key end

     0   :  { %v43_v0 = vlaneseq  ;;  %v2929_v12 = vmov 1.0   ;;  %vm180_vm0 = vcmask 39936   ;;  %vm91_vm1 = vcmask 1039360   ;;  %s3258_s0 = inlined_call_operand.vmem [shape: f32[4,2,256], index: 0, kind: input, shape index: {}]   ;;  %s3259_s1 = inlined_call_operand.vmem [shape: f32[32,5], index: 1, kind: input, shape index: {}]   ;;  %s3260_s2 = inlined_call_operand.vmem [shape: f32[4,32,9], index: 2, kind: output, shape index: {}]  }
   0x1   :  { %v2528_v1 = vld [vmem:[%s3258_s0 + $0x4] ss:$2 sm:$0x3]  ;;  %v16_v2 = vld [vmem:[%s3258_s0] ss:$2 sm:$0x3] }
   0x2   :  { %v44_v3 = vshrl.u32 %v43_v0, 7  ;;  %32 = vst [vmem:[#allocation2 + $0x8] sm:$0x1] %v2528_v1  ;;  %31 = vst [vmem:[#allocation2] sm:$0x1] %v16_v2  ;;  %v172_v15 = vld [vmem:[%s3259_s1] sm:$0xff] }
   0x3   :  { %v2531_v4 = vld [vmem:[%s3258_s0 + $0x1] ss:$2 sm:$0x3]  ;;  %v2532_v5 = vld [vmem:[%s3258_s0 + $0x5] ss:$2 sm:$0x3] }
   0x4   :  { %35 = vst [vmem:[#allocation2 + $0x1] sm:$0x1] %v2531_v4  ;;  %v2529_v6 = vld [vmem:[%s3258_s0 + $0x8] ss:$2 sm:$0x3]  ;;  %v2961_v7 = vsub.s32 0, %v44_v3 }
   0x5   :  { %v49_v8 = vsub.s32 1, %v44_v3  ;;  %36 = vst [vmem:[#allocation2 + $0x9] sm:$0x1] %v2532_v5  ;;  %33 = vst [vmem:[#allocation2 + $0x10] sm:$0x1] %v2529_v6  ;;  %v173_v16 = vld [vmem:[%s3259_s1 + $0x8] sm:$0xff] }
   0x6   :  { %v2530_v9 = vld [vmem:[%s3258_s0 + $0xc] ss:$2 sm:$0x3]  ;;  %v2533_v10 = vld [vmem:[%s3258_s0 + $0x9] ss:$2 sm:$0x3]  ;;  %v54_v13 = vrot.slane %v2528_v1, %v2961_v7  ;;  %v46_v14 = vrot.slane %v16_v2, %v2961_v7  ;;  %v111_v26 = vrot.slane %v2531_v4, %v2961_v7  ;;  %v119_v31 = vrot.slane %v2532_v5, %v2961_v7 }
   0x7   :  { %34 = vst [vmem:[#allocation2 + $0x18] sm:$0x1] %v2530_v9  ;;  %v2534_v11 = vld [vmem:[%s3258_s0 + $0xd] ss:$2 sm:$0x3]  ;;  %s2930_s0 = smov 127   ;;  %v58_v17 = vrot.slane %v2528_v1, %v49_v8  ;;  %v50_v18 = vrot.slane %v16_v2, %v49_v8  ;;  %v115_v25 = vrot.slane %v2531_v4, %v49_v8  ;;  %v123_v30 = vrot.slane %v2532_v5, %v49_v8 }
   0x8   :  { %168 = vst [vmem:[#allocation2 + $0x4] sm:$0x1] %v2929_v12  ;;  %169 = vst [vmem:[#allocation2 + $0xc] sm:$0x1] %v2929_v12  ;;  %79 = vrot.lane.b32.xlu1 %v54_v13, %s2930_s0  ;;  %75 = vrot.lane.b32.xlu0 %v46_v14, %s2930_s0  ;;  %v174_v19 = vld [vmem:[%s3259_s1 + $0x10] sm:$0xff]  ;;  %v175_v20 = vld [vmem:[%s3259_s1 + $0x18] sm:$0xff]  ;;  %v66_v34 = vrot.slane %v2529_v6, %v49_v8  ;;  %v62_v35 = vrot.slane %v2529_v6, %v2961_v7 }
   0x9   :  { %170 = vst [vmem:[#allocation2 + $0x14] sm:$0x1] %v2929_v12  ;;  %171 = vst [vmem:[#allocation2 + $0x1c] sm:$0x1] %v2929_v12  ;;  %v182_v21 = vsel %vm180_vm0, %v172_v15, 0  ;;  %v185_v22 = vsel %vm180_vm0, %v173_v16, 0  ;;  %v74_v36 = vrot.slane %v2530_v9, %v49_v8  ;;  %v70_v37 = vrot.slane %v2530_v9, %v2961_v7 }
   0xa   :  { %37 = vst [vmem:[#allocation2 + $0x11] sm:$0x1] %v2533_v10  ;;  %38 = vst [vmem:[#allocation2 + $0x19] sm:$0x1] %v2534_v11  ;;  %v188_v23 = vsel %vm180_vm0, %v174_v19, 0  ;;  %v2988_v24 = vand.u32 4294901760, %v182_v21  ;;  %v131_v38 = vrot.slane %v2533_v10, %v49_v8  ;;  %v127_v39 = vrot.slane %v2533_v10, %v2961_v7 }
   0xb   :  { %v191_v27 = vsel %vm180_vm0, %v175_v20, 0  ;;  %v139_v40 = vrot.slane %v2534_v11, %v49_v8  ;;  %v135_v41 = vrot.slane %v2534_v11, %v2961_v7  ;;  %v3022_v44 = vand.u32 4294901760, %v185_v22 }
   0xc   :  { %81 = vrot.lane.b32.xlu1 %v58_v17, %s2930_s0  ;;  %77 = vrot.lane.b32.xlu0 %v50_v18, %s2930_s0  ;;  %v2994_v28 = vsub.f32 %v182_v21, %v2988_v24  ;;  %v3024_v47 = vand.u32 4294901760, %v188_v23  ;;  %v3031_v51 = vand.u32 4294901760, %v191_v27  ;;  %vm193_vm2 = vcmask 1044480  }
   0xd   :  { %v3029_v50 = vsub.f32 %v185_v22, %v3022_v44 }
   0xe   :  { %v2997_v29 = vand.u32 4294901760, %v2994_v28  ;;  %v3034_v54 = vsub.f32 %v188_v23, %v3024_v47  ;;  %v3041_v57 = vsub.f32 %v191_v27, %v3031_v51 }
   0xf   :  { %v3038_v56 = vand.u32 4294901760, %v3029_v50 }
  0x10   :  { %142 = vrot.lane.b32.xlu1 %v115_v25, %s2930_s0  ;;  %140 = vrot.lane.b32.xlu0 %v111_v26, %s2930_s0  ;;  %v266_v32 = vsub.f32 %v2994_v28, %v2997_v29  ;;  %v3044_v60 = vand.u32 4294901760, %v3034_v54  ;;  %v3050_v63 = vand.u32 4294901760, %v3041_v57 }
  0x11   :  { %v276_v62 = vsub.f32 %v3029_v50, %v3038_v56 }
  0x12   :  { %v3004_v33 = vand.u32 4294901760, %v266_v32  ;;  %v286_v0 = vsub.f32 %v3034_v54, %v3044_v60  ;;  %v296_v8 = vsub.f32 %v3041_v57, %v3050_v63 }
  0x13   :  { %v3058_v7 = vand.u32 4294901760, %v276_v62 }
  0x14   :  { %146 = vrot.lane.b32.xlu1 %v123_v30, %s2930_s0  ;;  %144 = vrot.lane.b32.xlu0 %v119_v31, %s2930_s0  ;;  %v3062_v9 = vand.u32 4294901760, %v286_v0  ;;  %v3072_v17 = vand.u32 4294901760, %v296_v8 }
  0x15   :  { %2657 = vmatprep.mubr.f32.mxu0 %v3004_v33  ;;  %2705 = vmatprep.mubr.f32.mxu1 %v3004_v33 }
  0x18   :  { %85 = vrot.lane.b32.xlu1 %v66_v34, %s2930_s0  ;;  %83 = vrot.lane.b32.xlu0 %v62_v35, %s2930_s0 }
  0x1c   :  { %89 = vrot.lane.b32.xlu1 %v74_v36, %s2930_s0  ;;  %87 = vrot.lane.b32.xlu0 %v70_v37, %s2930_s0 }
  0x20   :  { %150 = vrot.lane.b32.xlu1 %v131_v38, %s2930_s0  ;;  %148 = vrot.lane.b32.xlu0 %v127_v39, %s2930_s0 }
  0x24   :  { %154 = vrot.lane.b32.xlu1 %v139_v40, %s2930_s0  ;;  %152 = vrot.lane.b32.xlu0 %v135_v41, %s2930_s0 }
  0x7a   :  { %v80_v42 = vpop.permute.xlu1 %79  ;;  %v76_v43 = vpop.permute.xlu0 %75 }
  0x7e   :  { %v82_v45 = vpop.permute.xlu1 %81  ;;  %v78_v46 = vpop.permute.xlu0 %77 }
  0x7f   :  { %v93_v48 = vsel %vm91_vm1, %v80_v42, %v82_v45  ;;  %v92_v49 = vsel %vm91_vm1, %v76_v43, %v78_v46 }
  0x80   :  { %101 = vst [vmem:[#allocation2 + $0xa] sm:$0x1] %v93_v48  ;;  %100 = vst [vmem:[#allocation2 + $0x2] sm:$0x1] %v92_v49 }
  0x82   :  { %v143_v52 = vpop.permute.xlu1 %142  ;;  %v141_v53 = vpop.permute.xlu0 %140 }
  0x83   :  { %v156_v55 = vsel %vm91_vm1, %v141_v53, %v143_v52 }
  0x84   :  { %164 = vst [vmem:[#allocation2 + $0x3] sm:$0x1] %v156_v55 }
  0x86   :  { %v147_v58 = vpop.permute.xlu1 %146  ;;  %v145_v59 = vpop.permute.xlu0 %144 }
  0x87   :  { %v157_v61 = vsel %vm91_vm1, %v145_v59, %v147_v58 }
  0x88   :  { %165 = vst [vmem:[#allocation2 + $0xb] sm:$0x1] %v157_v61 }
  0x8a   :  { %v86_v1 = vpop.permute.xlu1 %85  ;;  %v84_v2 = vpop.permute.xlu0 %83 }
  0x8b   :  { %v176_v3 = vld [vmem:[#allocation2] sm:$0x1f]  ;;  %v94_v4 = vsel %vm91_vm1, %v84_v2, %v86_v1 }
  0x8c   :  { %v195_v5 = vsel %vm193_vm2, %v176_v3, 0  ;;  %102 = vst [vmem:[#allocation2 + $0x12] sm:$0x1] %v94_v4 }
  0x8d   :  { %v3056_v6 = vand.u32 4294901760, %v195_v5 }
  0x8e   :  { %v90_v10 = vpop.permute.xlu1 %89  ;;  %v88_v11 = vpop.permute.xlu0 %87 }
  0x8f   :  { %2655 = vmatprep.subr.mxu0 %v3056_v6  ;;  %v177_v12 = vld [vmem:[#allocation2 + $0x8] sm:$0x1f]  ;;  %v305_v13 = vsub.f32 %v195_v5, %v3056_v6  ;;  %v95_v14 = vsel %vm91_vm1, %v88_v11, %v90_v10 }
  0x90   :  { %2656 = vmatpush3.msra.mxu0 %v3056_v6  ;;  %v773_v15 = vsel %vm193_vm2, %v177_v12, 0  ;;  %103 = vst [vmem:[#allocation2 + $0x1a] sm:$0x1] %v95_v14 }
  0x91   :  { %2658 = vmatmul.mubr.f32.vlgmr.msra.gmra.mrb[0].mxu0 %v3058_v7  ;;  %v3070_v16 = vand.u32 4294901760, %v773_v15  ;;  %v306_v18 = vand.u32 4294901760, %v305_v13 }
  0x92   :  { %2660 = vmatprep.mubr.f32.mxu0 %v3062_v9  ;;  %v151_v19 = vpop.permute.xlu1 %150  ;;  %v149_v20 = vpop.permute.xlu0 %148 }
  0x93   :  { %2703 = vmatprep.subr.mxu1 %v3070_v16  ;;  %v307_v21 = vsub.f32 %v305_v13, %v306_v18  ;;  %v883_v22 = vsub.f32 %v773_v15, %v3070_v16  ;;  %v158_v23 = vsel %vm91_vm1, %v149_v20, %v151_v19 }
  0x94   :  { %2704 = vmatpush3.msra.mxu1 %v3070_v16  ;;  %166 = vst [vmem:[#allocation2 + $0x13] sm:$0x1] %v158_v23 }
  0x95   :  { %2661 = vmatmul.mubr.f32.gmra.mrb[2].mxu0 %v3072_v17  ;;  %2706 = vmatmul.mubr.f32.vlgmr.msra.gmra.mrb[0].mxu1 %v3058_v7  ;;  %v308_v25 = vand.u32 4294901760, %v307_v21  ;;  %v884_v26 = vand.u32 4294901760, %v883_v22 }
  0x96   :  { %2665 = vmatprep.mubr.f32.mxu0 %v2988_v24  ;;  %2708 = vmatprep.mubr.f32.mxu1 %v3062_v9  ;;  %v155_v27 = vpop.permute.xlu1 %154  ;;  %v153_v30 = vpop.permute.xlu0 %152 }
  0x97   :  { %2663 = vmatprep.subr.mxu0 %v308_v25  ;;  %v885_v31 = vsub.f32 %v883_v22, %v884_v26  ;;  %v159_v32 = vsel %vm91_vm1, %v153_v30, %v155_v27 }
  0x98   :  { %2664 = vmatpush3.msra.mxu0 %v308_v25  ;;  %167 = vst [vmem:[#allocation2 + $0x1b] sm:$0x1] %v159_v32 }
  0x99   :  { %2666 = vmatmul.mubr.f32.vlgmr.msra.gmra.mrb[0].mxu0 %v3022_v44  ;;  %2671 = vmatprep.subr.mxu0 %v305_v13  ;;  %v886_v34 = vand.u32 4294901760, %v885_v31 }
  0x9a   :  { %2709 = vmatmul.mubr.f32.gmra.mrb[2].mxu1 %v3072_v17  ;;  %2672 = vmatpush3.msra.mxu0 %v305_v13 }
  0x9b   :  { %2679 = vmatprep.subr.mxu0 %v3056_v6  ;;  %2711 = vmatprep.subr.mxu1 %v886_v34  ;;  %v178_v35 = vld [vmem:[#allocation2 + $0x10] sm:$0x1f] }
  0x9c   :  { %2668 = vmatprep.mubr.f32.mxu0 %v3024_v47  ;;  %2712 = vmatpush3.msra.mxu1 %v886_v34  ;;  %v1351_v36 = vsel %vm193_vm2, %v178_v35, 0 }
  0x9d   :  { %2713 = vmatprep.mubr.f32.mxu1 %v2988_v24  ;;  %2669 = vmatmul.mubr.f32.gmra.mrb[2].mxu0 %v3031_v51  ;;  %v3105_v38 = vand.u32 4294901760, %v1351_v36 }
  0x9e   :  { %2714 = vmatmul.mubr.f32.vlgmr.msra.gmra.mrb[0].mxu1 %v3022_v44  ;;  %2719 = vmatprep.subr.mxu1 %v883_v22 }
  0x9f   :  { %2720 = vmatpush3.msra.mxu1 %v883_v22  ;;  %2673 = vmatprep.mubr.f32.mxu0 %v2994_v28  ;;  %v179_v37 = vld [vmem:[#allocation2 + $0x18] sm:$0x1f]  ;;  %v1461_v40 = vsub.f32 %v1351_v36, %v3105_v38 }
  0xa0   :  { %2727 = vmatprep.subr.mxu1 %v3070_v16  ;;  %2716 = vmatprep.mubr.f32.mxu1 %v3024_v47  ;;  %v1929_v39 = vsel %vm193_vm2, %v179_v37, 0 }
  0xa1   :  { %2674 = vmatmul.mubr.f32.vlgmr.msra.gmra.mrb[0].mxu0 %v3029_v50  ;;  %v3114_v41 = vand.u32 4294901760, %v1929_v39  ;;  %v3120_v42 = vand.u32 4294901760, %v1461_v40 }
  0xa2   :  { %2680 = vmatpush3.msra.mxu0 %v3056_v6  ;;  %2717 = vmatmul.mubr.f32.gmra.mrb[2].mxu1 %v3031_v51 }
  0xa3   :  { %2687 = vmatprep.subr.mxu0 %v306_v18  ;;  %2676 = vmatprep.mubr.f32.mxu0 %v3034_v54  ;;  %v2039_v43 = vsub.f32 %v1929_v39, %v3114_v41  ;;  %v1463_v45 = vsub.f32 %v1461_v40, %v3120_v42 }
  0xa4   :  { %2721 = vmatprep.mubr.f32.mxu1 %v2994_v28 }
  0xa5   :  { %2677 = vmatmul.mubr.f32.gmra.mrb[2].mxu0 %v3041_v57  ;;  %v3131_v46 = vand.u32 4294901760, %v2039_v43  ;;  %v1464_v48 = vand.u32 4294901760, %v1463_v45 }
  0xa6   :  { %2722 = vmatmul.mubr.f32.vlgmr.msra.gmra.mrb[0].mxu1 %v3029_v50  ;;  %2681 = vmatprep.mubr.f32.mxu0 %v2997_v29 }
  0xa7   :  { %2728 = vmatpush3.msra.mxu1 %v3070_v16  ;;  %2724 = vmatprep.mubr.f32.mxu1 %v3034_v54  ;;  %v2041_v49 = vsub.f32 %v2039_v43, %v3131_v46 }
  0xa8   :  { %2735 = vmatprep.subr.mxu1 %v884_v26 }
  0xa9   :  { %2682 = vmatmul.mubr.f32.vlgmr.msra.gmra.mrb[0].mxu0 %v3038_v56  ;;  %v2042_v52 = vand.u32 4294901760, %v2041_v49 }
  0xaa   :  { %2688 = vmatpush3.msra.mxu0 %v306_v18  ;;  %2725 = vmatmul.mubr.f32.gmra.mrb[2].mxu1 %v3041_v57 }
  0xab   :  { %2695 = vmatprep.subr.mxu0 %v3056_v6  ;;  %2684 = vmatprep.mubr.f32.mxu0 %v3044_v60 }
  0xac   :  { %2729 = vmatprep.mubr.f32.mxu1 %v2997_v29 }
  0xad   :  { %2685 = vmatmul.mubr.f32.gmra.mrb[2].mxu0 %v3050_v63 }
  0xae   :  { %2730 = vmatmul.mubr.f32.vlgmr.msra.gmra.mrb[0].mxu1 %v3038_v56  ;;  %2689 = vmatprep.mubr.f32.mxu0 %v2988_v24 }
  0xaf   :  { %2736 = vmatpush3.msra.mxu1 %v884_v26  ;;  %2732 = vmatprep.mubr.f32.mxu1 %v3044_v60 }
  0xb0   :  { %2743 = vmatprep.subr.mxu1 %v3070_v16 }
  0xb1   :  { %2690 = vmatmul.mubr.f32.vlgmr.msra.gmra.mrb[0].mxu0 %v3022_v44 }
  0xb2   :  { %2696 = vmatpush3.msra.mxu0 %v3056_v6  ;;  %2733 = vmatmul.mubr.f32.gmra.mrb[2].mxu1 %v3050_v63 }
  0xb3   :  { %2692 = vmatprep.mubr.f32.mxu0 %v3024_v47  ;;  %2737 = vmatprep.mubr.f32.mxu1 %v2988_v24 }
  0xb4   :  { %2751 = vmatprep.subr.mxu0 %v3105_v38 }
  0xb5   :  { %2693 = vmatmul.mubr.f32.gmra.mrb[2].mxu0 %v3031_v51 }
  0xb6   :  { %2738 = vmatmul.mubr.f32.vlgmr.msra.gmra.mrb[0].mxu1 %v3022_v44  ;;  %2697 = vmatprep.mubr.f32.mxu0 %v2988_v24 }
  0xb7   :  { %2744 = vmatpush3.msra.mxu1 %v3070_v16  ;;  %2740 = vmatprep.mubr.f32.mxu1 %v3024_v47 }
  0xb8   :  { %2799 = vmatprep.subr.mxu1 %v3114_v41 }
  0xb9   :  { %2698 = vmatmul.mubr.f32.vlgmr.msra.gmra.mrb[0].mxu0 %v3022_v44 }
  0xba   :  { %2741 = vmatmul.mubr.f32.gmra.mrb[2].mxu1 %v3031_v51  ;;  %2752 = vmatpush3.msra.mxu0 %v3105_v38 }
  0xbb   :  { %2759 = vmatprep.subr.mxu0 %v1464_v48  ;;  %2700 = vmatprep.mubr.f32.mxu0 %v3024_v47 }
  0xbc   :  { %2745 = vmatprep.mubr.f32.mxu1 %v2988_v24 }
  0xbd   :  { %2701 = vmatmul.mubr.f32.gmra.mrb[2].mxu0 %v3031_v51 }
  0xbe   :  { %2746 = vmatmul.mubr.f32.vlgmr.msra.gmra.mrb[0].mxu1 %v3022_v44  ;;  %2753 = vmatprep.mubr.f32.mxu0 %v3004_v33 }
  0xbf   :  { %2800 = vmatpush3.msra.mxu1 %v3114_v41  ;;  %2748 = vmatprep.mubr.f32.mxu1 %v3024_v47 }
  0xc0   :  { %2807 = vmatprep.subr.mxu1 %v2042_v52 }
  0xc1   :  { %2754 = vmatmul.mubr.f32.vlgmr.msra.gmra.mrb[4].mxu0 %v3058_v7 }
  0xc2   :  { %2749 = vmatmul.mubr.f32.gmra.mrb[2].mxu1 %v3031_v51  ;;  %2760 = vmatpush3.msra.mxu0 %v1464_v48 }
  0xc3   :  { %2767 = vmatprep.subr.mxu0 %v1461_v40  ;;  %2756 = vmatprep.mubr.f32.mxu0 %v3062_v9 }
  0xc4   :  { %2801 = vmatprep.mubr.f32.mxu1 %v3004_v33 }
  0xc5   :  { %2757 = vmatmul.mubr.f32.gmra.mrb[6].mxu0 %v3072_v17 }
  0xc6   :  { %2802 = vmatmul.mubr.f32.vlgmr.msra.gmra.mrb[4].mxu1 %v3058_v7  ;;  %2761 = vmatprep.mubr.f32.mxu0 %v2988_v24 }
  0xc7   :  { %2808 = vmatpush3.msra.mxu1 %v2042_v52  ;;  %2804 = vmatprep.mubr.f32.mxu1 %v3062_v9 }
  0xc8   :  { %2815 = vmatprep.subr.mxu1 %v2039_v43 }
  0xc9   :  { %2762 = vmatmul.mubr.f32.vlgmr.msra.gmra.mrb[4].mxu0 %v3022_v44 }
  0xca   :  { %2768 = vmatpush3.msra.mxu0 %v1461_v40  ;;  %2805 = vmatmul.mubr.f32.gmra.mrb[6].mxu1 %v3072_v17 }
  0xcb   :  { %2775 = vmatprep.subr.mxu0 %v3105_v38  ;;  %2764 = vmatprep.mubr.f32.mxu0 %v3024_v47 }
  0xcc   :  { %2809 = vmatprep.mubr.f32.mxu1 %v2988_v24 }
  0xcd   :  { %2765 = vmatmul.mubr.f32.gmra.mrb[6].mxu0 %v3031_v51 }
  0xce   :  { %2810 = vmatmul.mubr.f32.vlgmr.msra.gmra.mrb[4].mxu1 %v3022_v44  ;;  %2769 = vmatprep.mubr.f32.mxu0 %v2994_v28 }
  0xcf   :  { %2816 = vmatpush3.msra.mxu1 %v2039_v43  ;;  %2812 = vmatprep.mubr.f32.mxu1 %v3024_v47 }
  0xd0   :  { %2823 = vmatprep.subr.mxu1 %v3114_v41 }
  0xd1   :  { %2770 = vmatmul.mubr.f32.vlgmr.msra.gmra.mrb[4].mxu0 %v3029_v50 }
  0xd2   :  { %2776 = vmatpush3.msra.mxu0 %v3105_v38  ;;  %2813 = vmatmul.mubr.f32.gmra.mrb[6].mxu1 %v3031_v51 }
  0xd3   :  { %2783 = vmatprep.subr.mxu0 %v3120_v42  ;;  %2772 = vmatprep.mubr.f32.mxu0 %v3034_v54 }
  0xd4   :  { %2817 = vmatprep.mubr.f32.mxu1 %v2994_v28 }
  0xd5   :  { %2773 = vmatmul.mubr.f32.gmra.mrb[6].mxu0 %v3041_v57 }
  0xd6   :  { %2818 = vmatmul.mubr.f32.vlgmr.msra.gmra.mrb[4].mxu1 %v3029_v50  ;;  %2777 = vmatprep.mubr.f32.mxu0 %v2997_v29 }
  0xd7   :  { %2824 = vmatpush3.msra.mxu1 %v3114_v41  ;;  %2820 = vmatprep.mubr.f32.mxu1 %v3034_v54 }
  0xd8   :  { %2831 = vmatprep.subr.mxu1 %v3131_v46 }
  0xd9   :  { %2778 = vmatmul.mubr.f32.vlgmr.msra.gmra.mrb[4].mxu0 %v3038_v56 }
  0xda   :  { %2784 = vmatpush3.msra.mxu0 %v3120_v42  ;;  %2821 = vmatmul.mubr.f32.gmra.mrb[6].mxu1 %v3041_v57 }
  0xdb   :  { %2791 = vmatprep.subr.mxu0 %v3105_v38  ;;  %2780 = vmatprep.mubr.f32.mxu0 %v3044_v60 }
  0xdc   :  { %2825 = vmatprep.mubr.f32.mxu1 %v2997_v29 }
  0xdd   :  { %2781 = vmatmul.mubr.f32.gmra.mrb[6].mxu0 %v3050_v63 }
  0xde   :  { %2826 = vmatmul.mubr.f32.vlgmr.msra.gmra.mrb[4].mxu1 %v3038_v56  ;;  %2785 = vmatprep.mubr.f32.mxu0 %v2988_v24 }
  0xdf   :  { %2832 = vmatpush3.msra.mxu1 %v3131_v46  ;;  %2828 = vmatprep.mubr.f32.mxu1 %v3044_v60 }
  0xe0   :  { %2839 = vmatprep.subr.mxu1 %v3114_v41 }
  0xe1   :  { %2786 = vmatmul.mubr.f32.vlgmr.msra.gmra.mrb[4].mxu0 %v3022_v44 }
  0xe2   :  { %2792 = vmatpush3.msra.mxu0 %v3105_v38  ;;  %2829 = vmatmul.mubr.f32.gmra.mrb[6].mxu1 %v3050_v63 }
  0xe3   :  { %2788 = vmatprep.mubr.f32.mxu0 %v3024_v47  ;;  %2833 = vmatprep.mubr.f32.mxu1 %v2988_v24 }
  0xe5   :  { %2789 = vmatmul.mubr.f32.gmra.mrb[6].mxu0 %v3031_v51 }
  0xe6   :  { %2834 = vmatmul.mubr.f32.vlgmr.msra.gmra.mrb[4].mxu1 %v3022_v44  ;;  %2793 = vmatprep.mubr.f32.mxu0 %v2988_v24 }
  0xe7   :  { %2840 = vmatpush3.msra.mxu1 %v3114_v41  ;;  %2836 = vmatprep.mubr.f32.mxu1 %v3024_v47 }
  0xe9   :  { %2794 = vmatmul.mubr.f32.vlgmr.msra.gmra.mrb[4].mxu0 %v3022_v44 }
  0xea   :  { %2837 = vmatmul.mubr.f32.gmra.mrb[6].mxu1 %v3031_v51  ;;  %2796 = vmatprep.mubr.f32.mxu0 %v3024_v47 }
  0xeb   :  { %2841 = vmatprep.mubr.f32.mxu1 %v2988_v24 }
  0xed   :  { %2797 = vmatmul.mubr.f32.gmra.mrb[6].mxu0 %v3031_v51 }
  0xee   :  { %2842 = vmatmul.mubr.f32.vlgmr.msra.gmra.mrb[4].mxu1 %v3022_v44 }
  0xef   :  { %2844 = vmatprep.mubr.f32.mxu1 %v3024_v47 }
  0xf2   :  { %2845 = vmatmul.mubr.f32.gmra.mrb[6].mxu1 %v3031_v51 }
 0x18c   :  { %v2699_v28 = vpop.f32.mrb[0].mxu0 }
 0x18d   :  { %2507 = vst [vmem:[%s3260_s2 + $0x8] sm:$0xff] %v2699_v28  ;;  %v750_v29 = vpop.f32.mrb[1].mxu0 }
 0x18e   :  { %2506 = vst [vmem:[%s3260_s2] sm:$0xff] %v750_v29 }
 0x190   :  { %v2702_v33 = vpop.f32.mrb[2].mxu0 }
 0x191   :  { %2509 = vst [vmem:[%s3260_s2 + $0x18] sm:$0xff] %v2702_v33  ;;  %v2747_v24 = vpop.f32.mrb[0].mxu1  ;;  %v762_v44 = vpop.f32.mrb[3].mxu0 }
 0x192   :  { %2511 = vst [vmem:[%s3260_s2 + $0x28] sm:$0xff] %v2747_v24  ;;  %2508 = vst [vmem:[%s3260_s2 + $0x10] sm:$0xff] %v762_v44  ;;  %v1328_v47 = vpop.f32.mrb[1].mxu1 }
 0x193   :  { %2510 = vst [vmem:[%s3260_s2 + $0x20] sm:$0xff] %v1328_v47 }
 0x195   :  { %v2750_v50 = vpop.f32.mrb[2].mxu1 }
 0x196   :  { %2513 = vst [vmem:[%s3260_s2 + $0x38] sm:$0xff] %v2750_v50  ;;  %v1340_v51 = vpop.f32.mrb[3].mxu1 }
 0x197   :  { %2512 = vst [vmem:[%s3260_s2 + $0x30] sm:$0xff] %v1340_v51 }
 0x1bc   :  { %v2795_v53 = vpop.f32.mrb[4].mxu0 }
 0x1bd   :  { %2515 = vst [vmem:[%s3260_s2 + $0x48] sm:$0xff] %v2795_v53  ;;  %v1906_v54 = vpop.f32.mrb[5].mxu0 }
 0x1be   :  { %2514 = vst [vmem:[%s3260_s2 + $0x40] sm:$0xff] %v1906_v54 }
 0x1c0   :  { %v2798_v55 = vpop.f32.mrb[6].mxu0 }
 0x1c1   :  { %2517 = vst [vmem:[%s3260_s2 + $0x58] sm:$0xff] %v2798_v55  ;;  %v2843_v56 = vpop.f32.mrb[4].mxu1  ;;  %v1918_v57 = vpop.f32.mrb[7].mxu0 }
 0x1c2   :  { %2519 = vst [vmem:[%s3260_s2 + $0x68] sm:$0xff] %v2843_v56  ;;  %2516 = vst [vmem:[%s3260_s2 + $0x50] sm:$0xff] %v1918_v57  ;;  %v2484_v58 = vpop.f32.mrb[5].mxu1 }
 0x1c3   :  { %2518 = vst [vmem:[%s3260_s2 + $0x60] sm:$0xff] %v2484_v58 }
 0x1c5   :  { %v2846_v59 = vpop.f32.mrb[6].mxu1 }
 0x1c6   :  { %2521 = vst [vmem:[%s3260_s2 + $0x78] sm:$0xff] %v2846_v59  ;;  %v2496_v60 = vpop.f32.mrb[7].mxu1 }
 0x1c7   :  { %2520 = vst [vmem:[%s3260_s2 + $0x70] sm:$0xff] %v2496_v60 }

</bundles_post_ra>
